<compile_context>
chip_gen: v6e
topology: v6e:2x2x1
jax: 0.10.0
libtpu: 0.0.40
codegen_flags: <defaults>
</compile_context>

<pallas_src>
import functools

import jax
import jax.numpy as jnp
from jax import lax
from jax.experimental import pallas as pl
from jax.experimental.pallas import tpu as pltpu


def _conv_im2col_kernel(x_ref, w_ref, b_ref, o_ref, *, K, stride, H_out, W_out):
    """One batch element per grid step.

    x_ref: (C_in, H_p, W_p)        reflect-padded image, channel-planar (W on lanes)
    w_ref: (C_out, K*K*C_in)       im2col-flattened weights, col = (kh*K + kw)*C_in + ci
    b_ref: (C_out, 1)
    o_ref: (C_out, H_out*W_out)    lane-dense flattened output (row-major over (h, w))
    """
    x = x_ref[...]                                  # single whole-tile load
    c_in = x.shape[0]

    # Gather the K*K taps (static slices of the loaded value) and stack them along the
    # contraction axis -> a single im2col RHS.
    taps = []
    for kh in range(K):
        for kw in range(K):
            if stride == 1:
                t = x[:, kh:kh + H_out, kw:kw + W_out]
            else:
                t = x[:,
                      kh:kh + (H_out - 1) * stride + 1:stride,
                      kw:kw + (W_out - 1) * stride + 1:stride]
            taps.append(t)                          # (C_in, H_out, W_out)

    stacked = jnp.concatenate(taps, axis=0)          # (K*K*C_in, H_out, W_out)
    rhs = stacked.reshape(K * K * c_in, H_out * W_out)

    # Single fused matmul (native dtype operands, f32 accumulation), bias folded in once.
    acc = jnp.dot(w_ref[...], rhs, preferred_element_type=jnp.float32)
    acc = acc + b_ref[...].astype(jnp.float32)       # (C_out, 1) broadcasts over lanes
    o_ref[...] = acc.astype(o_ref.dtype)


def conv_layer_pallas(x_nchw, weight_oihw, bias, stride):
    """Equivalent of ConvLayer.forward: Conv2d(C_in, C_out, K, stride,
    padding=K//2, padding_mode='reflect') applied to NCHW input."""
    N, C_in, H, W = x_nchw.shape
    C_out, _, K, _ = weight_oihw.shape
    pad = K // 2

    # TODO(synk): fold reflect padding into the kernel (boundary-row/col gathers) to avoid
    # materializing the padded tensor in HBM; kept as jnp.pad here for robustness.
    xp = x_nchw
    if pad > 0:
        xp = jnp.pad(x_nchw, ((0, 0), (0, 0), (pad, pad), (pad, pad)), mode="reflect")
    H_p, W_p = H + 2 * pad, W + 2 * pad
    H_out = (H_p - K) // stride + 1
    W_out = (W_p - K) // stride + 1

    # im2col weight layout: (O, I, Kh, Kw) -> (O, Kh, Kw, I) -> (O, K*K*I)
    w_mat = jnp.transpose(weight_oihw, (0, 2, 3, 1)).reshape(C_out, K * K * C_in)
    b_col = bias.reshape(C_out, 1)

    kernel = functools.partial(
        _conv_im2col_kernel, K=K, stride=stride, H_out=H_out, W_out=W_out)

    # TODO(synk): for large images (esp. v7x's 64 MiB VMEM) tile over H with a halo
    # (manual pl.ANY + pltpu.make_async_copy); whole padded image per batch element is
    # kept resident here since it is tiny at these shapes.
    out_flat = pl.pallas_call(
        kernel,
        out_shape=jax.ShapeDtypeStruct((N, C_out, H_out * W_out), x_nchw.dtype),
        grid=(N,),
        in_specs=[
            pl.BlockSpec((None, C_in, H_p, W_p), lambda n: (n, 0, 0, 0)),
            pl.BlockSpec((C_out, K * K * C_in), lambda n: (0, 0)),
            pl.BlockSpec((C_out, 1), lambda n: (0, 0)),
        ],
        out_specs=pl.BlockSpec((None, C_out, H_out * W_out), lambda n: (n, 0, 0)),
        compiler_params=pltpu.CompilerParams(dimension_semantics=("parallel",)),
    )(xp, w_mat, b_col)

    # Trailing-dim split is a free (metadata) reshape back to NCHW.
    return out_flat.reshape(N, C_out, H_out, W_out)


def conv_layer_reference(x_nchw, weight_oihw, bias, stride):
    """Pure-JAX reference matching torch.nn.Conv2d(..., padding_mode='reflect')."""
    K = weight_oihw.shape[-1]
    pad = K // 2
    xp = jnp.pad(x_nchw, ((0, 0), (0, 0), (pad, pad), (pad, pad)), mode="reflect")
    y = lax.conv_general_dilated(
        xp, weight_oihw, (stride, stride), "VALID",
        dimension_numbers=("NCHW", "OIHW", "NCHW"),
    )
    return y + bias[None, :, None, None]


if __name__ == "__main__":
    # ConvLayer(in_channels=4, out_channels=8, kernel_size=3, stride=1)
    in_channels, out_channels, kernel_size, stride = 4, 8, 3, 1
    N, H, W = 2, 16, 16

    key = jax.random.PRNGKey(0)
    kx, kw, kb = jax.random.split(key, 3)

    x = jax.random.normal(kx, (N, in_channels, H, W), dtype=jnp.float32)

    # deterministic PyTorch-style init: U(-1/sqrt(fan_in), 1/sqrt(fan_in))
    fan_in = in_channels * kernel_size * kernel_size
    bound = 1.0 / (fan_in ** 0.5)
    weight = jax.random.uniform(
        kw, (out_channels, in_channels, kernel_size, kernel_size),
        minval=-bound, maxval=bound, dtype=jnp.float32)
    bias = jax.random.uniform(
        kb, (out_channels,), minval=-bound, maxval=bound, dtype=jnp.float32)

    out = conv_layer_pallas(x, weight, bias, stride)
    out = jax.block_until_ready(out)

    ref = jax.block_until_ready(conv_layer_reference(x, weight, bias, stride))

    assert out.shape == (N, out_channels, H, W), out.shape
    assert jnp.allclose(out, ref, atol=1e-4, rtol=1e-4), float(jnp.max(jnp.abs(out - ref)))

    print("KERNEL_OK")
</pallas_src>

<mosaic_0001>
module attributes {stable_mosaic.version = 11 : i64} {
  func.func @_conv_im2col_kernel(%arg0: i32, %arg1: memref<1x4x18x18xf32, #tpu.memory_space<vmem>>, %arg2: memref<8x36xf32, #tpu.memory_space<vmem>>, %arg3: memref<8x1xf32, #tpu.memory_space<vmem>>, %arg4: memref<1x8x256xf32, #tpu.memory_space<vmem>>) attributes {dimension_semantics = [#tpu.dimension_semantics<parallel>], iteration_bounds = array<i64: 2>, scalar_prefetch = 0 : i64, scratch_operands = 0 : i64, tpu.core_type = #tpu.core_type<tc>, window_params = [{transform_indices = @transform_0, window_bounds = array<i64: 1, 4, 18, 18>}, {pipeline_mode = #tpu.pipeline_mode<synchronous>, transform_indices = @transform_1, window_bounds = array<i64: 8, 36>}, {pipeline_mode = #tpu.pipeline_mode<synchronous>, transform_indices = @transform_2, window_bounds = array<i64: 8, 1>}, {transform_indices = @transform_3, window_bounds = array<i64: 1, 8, 256>}]} {
    %c0 = arith.constant 0 : index
    %c0_0 = arith.constant 0 : index
    %c0_1 = arith.constant 0 : index
    %c0_2 = arith.constant 0 : index
    %0 = vector.load %arg1[%c0, %c0_0, %c0_1, %c0_2] : memref<1x4x18x18xf32, #tpu.memory_space<vmem>>, vector<1x4x18x18xf32>
    %1 = vector.shape_cast %0 : vector<1x4x18x18xf32> to vector<4x18x18xf32>
    %2 = vector.extract_strided_slice %1 {offsets = [0, 0, 0], sizes = [4, 16, 16], strides = [1, 1, 1]} : vector<4x18x18xf32> to vector<4x16x16xf32>
    %3 = vector.extract_strided_slice %1 {offsets = [0, 0, 1], sizes = [4, 16, 16], strides = [1, 1, 1]} : vector<4x18x18xf32> to vector<4x16x16xf32>
    %4 = vector.extract_strided_slice %1 {offsets = [0, 0, 2], sizes = [4, 16, 16], strides = [1, 1, 1]} : vector<4x18x18xf32> to vector<4x16x16xf32>
    %5 = vector.extract_strided_slice %1 {offsets = [0, 1, 0], sizes = [4, 16, 16], strides = [1, 1, 1]} : vector<4x18x18xf32> to vector<4x16x16xf32>
    %6 = vector.extract_strided_slice %1 {offsets = [0, 1, 1], sizes = [4, 16, 16], strides = [1, 1, 1]} : vector<4x18x18xf32> to vector<4x16x16xf32>
    %7 = vector.extract_strided_slice %1 {offsets = [0, 1, 2], sizes = [4, 16, 16], strides = [1, 1, 1]} : vector<4x18x18xf32> to vector<4x16x16xf32>
    %8 = vector.extract_strided_slice %1 {offsets = [0, 2, 0], sizes = [4, 16, 16], strides = [1, 1, 1]} : vector<4x18x18xf32> to vector<4x16x16xf32>
    %9 = vector.extract_strided_slice %1 {offsets = [0, 2, 1], sizes = [4, 16, 16], strides = [1, 1, 1]} : vector<4x18x18xf32> to vector<4x16x16xf32>
    %10 = vector.extract_strided_slice %1 {offsets = [0, 2, 2], sizes = [4, 16, 16], strides = [1, 1, 1]} : vector<4x18x18xf32> to vector<4x16x16xf32>
    %11 = tpu.concatenate %2, %3, %4, %5, %6, %7, %8, %9, %10 in 0 : vector<4x16x16xf32>, vector<4x16x16xf32>, vector<4x16x16xf32>, vector<4x16x16xf32>, vector<4x16x16xf32>, vector<4x16x16xf32>, vector<4x16x16xf32>, vector<4x16x16xf32>, vector<4x16x16xf32> -> vector<36x16x16xf32>
    %12 = vector.shape_cast %11 : vector<36x16x16xf32> to vector<36x256xf32>
    %c0_3 = arith.constant 0 : index
    %c0_4 = arith.constant 0 : index
    %13 = vector.load %arg2[%c0_3, %c0_4] : memref<8x36xf32, #tpu.memory_space<vmem>>, vector<8x36xf32>
    %cst = arith.constant dense<0.000000e+00> : vector<8x256xf32>
    %14 = tpu.matmul %13, %12, %cst {dimension_numbers = #tpu.dot_dimension_numbers<[1], [0], [0], [1], [0, 0, 1, 1], [], []>} : vector<8x36xf32>, vector<36x256xf32>, vector<8x256xf32> -> vector<8x256xf32>
    %c0_5 = arith.constant 0 : index
    %c0_6 = arith.constant 0 : index
    %15 = vector.load %arg3[%c0_5, %c0_6] : memref<8x1xf32, #tpu.memory_space<vmem>>, vector<8x1xf32>
    %16 = vector.broadcast %15 : vector<8x1xf32> to vector<8x256xf32>
    %17 = arith.addf %14, %16 : vector<8x256xf32>
    %c0_7 = arith.constant 0 : index
    %c0_8 = arith.constant 0 : index
    %c0_9 = arith.constant 0 : index
    %18 = vector.load %arg4[%c0_7, %c0_8, %c0_9] : memref<1x8x256xf32, #tpu.memory_space<vmem>>, vector<1x8x256xf32>
    %19 = vector.shape_cast %18 : vector<1x8x256xf32> to vector<8x256xf32>
    %20 = vector.shape_cast %17 : vector<8x256xf32> to vector<1x8x256xf32>
    tpu.vector_store %arg4[%c0_7, %c0_8, %c0_9], %20 {strides = array<i32>} : memref<1x8x256xf32, #tpu.memory_space<vmem>>, vector<1x8x256xf32>,
    return
  }
  func.func @transform_0(%arg0: i32) -> (i32, i32, i32, i32) {
    %c0_i32 = arith.constant 0 : i32
    %c0_i32_0 = arith.constant 0 : i32
    %c0_i32_1 = arith.constant 0 : i32
    %c0_i32_2 = arith.constant 0 : i32
    return %arg0, %c0_i32, %c0_i32_0, %c0_i32_1 : i32, i32, i32, i32
  }
  func.func @transform_1(%arg0: i32) -> (i32, i32) {
    %c0_i32 = arith.constant 0 : i32
    %c0_i32_0 = arith.constant 0 : i32
    %c0_i32_1 = arith.constant 0 : i32
    return %c0_i32, %c0_i32_0 : i32, i32
  }
  func.func @transform_2(%arg0: i32) -> (i32, i32) {
    %c0_i32 = arith.constant 0 : i32
    %c0_i32_0 = arith.constant 0 : i32
    %c0_i32_1 = arith.constant 0 : i32
    return %c0_i32, %c0_i32_0 : i32, i32
  }
  func.func @transform_3(%arg0: i32) -> (i32, i32, i32) {
    %c0_i32 = arith.constant 0 : i32
    %c0_i32_0 = arith.constant 0 : i32
    %c0_i32_1 = arith.constant 0 : i32
    return %arg0, %c0_i32, %c0_i32_0 : i32, i32, i32
  }
}

</mosaic_0001>

<bundles_post_ra>
// kernel: tpu_custom_call.1
= control target key start
LH: loop header
LB: loop body
LE: loop exit
PB: predicated region body
PF: predicated region fallthrough
CT: control target
= control target key end

     0   :  { %8 = vsyncpa [#allocation3], 0  ;;  %s3532_s0 = inlined_call_operand.vmem [shape: f32[2,4,18,18], index: 0, kind: input, shape index: {}]   ;;  %s3533_s1 = inlined_call_operand.vmem [shape: f32[8,36], index: 1, kind: input, shape index: {}]   ;;  %s3534_s2 = inlined_call_operand.vmem [shape: f32[8,1], index: 2, kind: input, shape index: {}]   ;;  %s3535_s3 = inlined_call_operand.hbm [shape: f32[2,8,256], index: 3, kind: output, shape index: {}]  }
   0x1   :  { %10 = vsyncpa [#allocation3 + $0x1], 0  ;;  %s2314_s12 = smov 0   ;;  %s2316_s13 = smov 0  }
   0x2   :  { %s2318_s14 = smov 0   ;;  %s2320_s15 = smov 0  }
   0x3 LB: > { %s2335_s16 = sadd.s32 4294967295, %s2278_s15   ;;  %s2141_s17 = sadd.s32 4294967294, %s2278_s15   ;;  %s2278_s15 = sphi %s2320_s15, %s3655_s15   ;;  %s2274_s14 = sphi %s2318_s14, %s3654_s14   ;;  %s2270_s13 = sphi %s2316_s13, %s3653_s13   ;;  %s2266_s12 = sphi %s2314_s12, %s3652_s12  }
   0x4   : > { %s2339_s18 = sadd.s32 1, %s2278_s15   ;;  %s91_s19 = sadd.s32 1, %s2274_s14 }
   0x5   : > { %s88_s20 = ssub.s32 %s2278_s15, %s2339_s18  ;;  %p101_p0 = scmp.ne.s32.totalorder %s2274_s14, %s2270_s13 }
   0x6   : > { %p89_p1 = scmp.eq.s32.totalorder %s88_s20, 0  ;;  %p102_p2 = scmp.eq.s32.totalorder %s2335_s16, 1 }
   0x7   : > { %p107_p3 = scmp.ne.s32.totalorder %s2270_s13, %s2266_s12  ;;  %p108_p4 = scmp.eq.s32.totalorder %s2141_s17, 1 }
   0x8   : > { %s2350_s21 = scalar_select %p89_p1, %s2274_s14, %s91_s19  }
   0x9   : > { %p2352_p5 = por %p102_p2, %p101_p0  ;;  %p2356_p6 = por %p108_p4, %p107_p3 }
   0xa   : > { %p2144_p7 = scmp.ge.s32.totalorder %s2278_s15, 1  ;;  %p140_p8 = scmp.lt.s32.totalorder %s2278_s15, 3 }
   0xc   : > { %p141_p9 = pnand %p2144_p7, %p140_p8 }
   0xe   : > { %144 = sbr.rel (%p141_p9) target bundleno = 651 (0x28b), region = 32 }
  0x13   : > { %p164_p10 = scmp.lt.s32.totalorder %s2335_s16, 1  ;;  %vm318_vm0 = vcmask 1045504   ;;  %v400_v3 = vlaneseq  ;;  %v2280_v10 = vmov 1983009808   ;;  %s2281_s29 = smov 126   ;;  %vm241_vm1 = vcmask 1046528  }
  0x14   : > { %v398_v11 = vunpack.c.l.s4 %v2280_v10  ;;  %s2283_s30 = smov 127   ;;  %s2285_s4 = smov 32   ;;  %vm1899_vm2 = vcmask 130048   ;;  %vm1905_vm3 = vcmask 261120   ;;  %vm1911_vm4 = vcmask 392192  }
  0x15   : > { %s165_s24 = scalar_select %p164_p10, %s2335_s16, 1  ;;  %v2397_v22 = vshrl.u32 %v400_v3, 7  ;;  %vm1917_vm5 = vcmask 523264   ;;  %vm1923_vm6 = vcmask 654336   ;;  %vm1929_vm7 = vcmask 785408  }
  0x16   : > { %v399_v31 = vunpack.c.0.s8 %v398_v11  ;;  %s2286_s5 = smov 96   ;;  %s2287_s6 = smov 16   ;;  %vm1935_vm8 = vcmask 916480   ;;  %vm1987_vm9 = vcmask 1043456   ;;  %vm1983_vm10 = vcmask 293888  }
  0x17   : > { %s2156_s25 = smul.u32 96, %s165_s24  ;;  %s2288_s7 = smov 64  }
  0x18   : > { %v2436_v45 = vsub.s32 %v399_v31, %v2397_v22  ;;  %s2289_s8 = smov 48   ;;  %s2290_s9 = smov 80  }
  0x19   : > { %s168_s28 = scalar_lea.vmem %s3532_s0, %s2156_s25  ;;  %s2291_s10 = smov 112  }
  0x1a   : > { %v2367_v0 = vld [vmem:[%s168_s28 + $0x38] sm:$0xff]  ;;  %v2369_v1 = vld [vmem:[%s168_s28 + $0x40] sm:$0x3]  ;;  %v2371_v2 = vld [vmem:[%s168_s28 + $0x8] sm:$0xff]  ;;  %s161_s24 = sand.u32 1, %s2270_s13   ;;  %s2155_s26 = sshll.u32 %s2335_s16, 8 }
  0x1b   : > { %3573 = vst [vmem:[#allocation5_spill] sm:$0xff] %v2371_v2  ;;  %v330_v4 = vrot.slane %v2367_v0, 2  ;;  %v332_v5 = vrot.slane %v2369_v1, 2  ;;  %v2375_v6 = vld [vmem:[%s168_s28 + $0x10] sm:$0x3]  ;;  %v320_v7 = vrot.slane %v2371_v2, 2 }
  0x1c   : > { %v2378_v8 = vld [vmem:[%s168_s28 + $0x50] sm:$0xff]  ;;  %v322_v9 = vrot.slane %v2375_v6, 2  ;;  %v180_v12 = vld [vmem:[%s168_s28 + $0x58] sm:$0x3]  ;;  %v2382_v14 = vld [vmem:[%s168_s28 + $0x20] sm:$0xff]  ;;  %v243_v48 = vrot.slane %v2371_v2, 1 }
  0x1d   : > { %3574 = vst [vmem:[#allocation6_spill] sm:$0xff] %v2378_v8  ;;  %v335_v13 = vrot.slane %v2378_v8, 2  ;;  %3575 = vst [vmem:[#allocation7_spill] sm:$0xff] %v2382_v14  ;;  %v2384_v15 = vld [vmem:[%s168_s28 + $0x18] sm:$0xff]  ;;  %v2387_v16 = vsel %vm318_vm0, %v330_v4, %v332_v5  ;;  %v337_v17 = vrot.slane %v180_v12, 2  ;;  %v325_v19 = vrot.slane %v2382_v14, 2 }
  0x1e   : > { %v174_v18 = vld [vmem:[%s168_s28 + $0x28] sm:$0x3]  ;;  %v2390_v20 = vld [vmem:[%s168_s28] sm:$0xff]  ;;  %381 = vrot.lane.b32.xlu1 %v2387_v16, %s2281_s29  ;;  %v2395_v21 = vsel %vm318_vm0, %v320_v7, %v322_v9  ;;  %v324_v24 = vrot.slane %v2384_v15, 2  ;;  %v2402_v26 = vld [vmem:[%s168_s28 + $0x30] sm:$0xff]  ;;  %v248_v39 = vrot.slane %v2382_v14, 1 }
  0x1f   : > { %v327_v23 = vrot.slane %v174_v18, 2  ;;  %v2400_v25 = vld [vmem:[%s168_s28 + $0x48] sm:$0xff]  ;;  %373 = vrot.lane.b32.xlu0 %v2395_v21, %s2281_s29  ;;  %v1415_v27 = vcombine.low %v2395_v21, %v2387_v16  ;;  %v1416_v28 = vcombine.high %v2395_v21, %v2387_v16  ;;  %v2411_v29 = vsel %vm318_vm0, %v335_v13, %v337_v17  ;;  %s2145_s25 = sshll.u32 %s161_s24, 4 }
  0x20   : > { %v319_v30 = vrot.slane %v2390_v20, 2  ;;  %v334_v33 = vrot.slane %v2400_v25, 2  ;;  %v329_v34 = vrot.slane %v2402_v26, 2  ;;  %v2422_v37 = vsel %vm318_vm0, %v324_v24, %v325_v19  ;;  %s163_s27 = scalar_lea.vmem [#allocation2], %s2145_s25 }
  0x21   : > { %v328_v32 = vsel %vm318_vm0, %v325_v19, %v327_v23  ;;  %v250_v40 = vrot.slane %v174_v18, 1  ;;  %v245_v49 = vrot.slane %v2375_v6, 1  ;;  %v258_v50 = vrot.slane %v2378_v8, 1  ;;  %s2082_s28 = sshll.u32 %s163_s27, 4  ;;  %s2083_s28 = int_to_ptr.vmem [resolvable:$true] %s2082_s28 }
  0x22   : > { %v1431_v35 = vcombine.low %v328_v32, %v2411_v29  ;;  %v1432_v36 = vcombine.high %v328_v32, %v2411_v29  ;;  %385 = vrot.lane.b32.xlu1 %v2411_v29, %s2281_s29  ;;  %v2425_v38 = vsel %vm318_vm0, %v334_v33, %v335_v13  ;;  %v321_v41 = vsel %vm318_vm0, %v319_v30, %v320_v7 }
  0x23   : > { %377 = vrot.lane.b32.xlu0 %v328_v32, %s2281_s29  ;;  %v819_v42 = vcombine.low %v2422_v37, %v2425_v38  ;;  %v820_v43 = vcombine.high %v2422_v37, %v2425_v38  ;;  %v331_v44 = vsel %vm318_vm0, %v329_v34, %v330_v4  ;;  %v260_v51 = vrot.slane %v180_v12, 1 }
  0x24   : > { %v803_v46 = vcombine.low %v321_v41, %v331_v44  ;;  %v804_v47 = vcombine.high %v321_v41, %v331_v44  ;;  %v2442_v52 = vrot.slane %v1415_v27, %v2436_v45  ;;  %v2445_v53 = vrot.slane %v1431_v35, %v2436_v45 }
  0x25   : > { %v2450_v54 = vsel %vm241_vm1, %v248_v39, %v250_v40  ;;  %v253_v55 = vrot.slane %v2367_v0, 1  ;;  %v2455_v56 = vsel %vm241_vm1, %v258_v50, %v260_v51  ;;  %v255_v57 = vrot.slane %v2369_v1, 1 }
  0x26   : > { %375 = vrot.lane.b32.xlu1 %v2422_v37, %s2281_s29  ;;  %v247_v58 = vrot.slane %v2384_v15, 1  ;;  %v242_v59 = vrot.slane %v2390_v20, 1  ;;  %v1191_v60 = vcombine.low %v2450_v54, %v2455_v56  ;;  %v1192_v61 = vcombine.high %v2450_v54, %v2455_v56 }
  0x27   : > { %371 = vrot.lane.b32.xlu0 %v321_v41, %s2281_s29  ;;  %v257_v62 = vrot.slane %v2400_v25, 1  ;;  %v252_v63 = vrot.slane %v2402_v26, 1  ;;  %v2467_v3 = vrot.slane %v1416_v28, %v2436_v45  ;;  %v246_v4 = vsel %vm241_vm1, %v243_v48, %v245_v49 }
  0x28   : > { %v256_v1 = vsel %vm241_vm1, %v253_v55, %v255_v57  ;;  %v2472_v5 = vrot.slane %v1432_v36, %v2436_v45  ;;  %v2477_v9 = vsel %vm241_vm1, %v247_v58, %v248_v39  ;;  %v1479_v11 = vcombine.low %v2442_v52, %v2445_v53 }
  0x29   : > { %v1175_v6 = vcombine.low %v246_v4, %v256_v1  ;;  %v1176_v7 = vcombine.high %v246_v4, %v256_v1  ;;  %v2481_v10 = vsel %vm241_vm1, %v257_v62, %v258_v50  ;;  %v1480_v12 = vcombine.high %v2442_v52, %v2445_v53 }
  0x2a   : > { %383 = vrot.lane.b32.xlu1 %v2425_v38, %s2281_s29  ;;  %v244_v13 = vsel %vm241_vm1, %v242_v59, %v243_v48  ;;  %v579_v17 = vcombine.low %v2477_v9, %v2481_v10  ;;  %v580_v18 = vcombine.high %v2477_v9, %v2481_v10  ;;  %v254_v19 = vsel %vm241_vm1, %v252_v63, %v253_v55 }
  0x2b   : > { %379 = vrot.lane.b32.xlu0 %v331_v44, %s2281_s29  ;;  %v3536_v23 = vmov 0.0   ;;  %v563_v24 = vcombine.low %v244_v13, %v254_v19  ;;  %v564_v27 = vcombine.high %v244_v13, %v254_v19  ;;  %v2495_v28 = vrot.slane %v819_v42, %v2436_v45 }
  0x2c   : > { %2058 = vmatprep.mubr.f32.mxu0 %v3536_v23  ;;  %v2498_v30 = vrot.slane %v803_v46, %v2436_v45  ;;  %v2506_v34 = vrot.slane %v820_v43, %v2436_v45  ;;  %v2509_v35 = vrot.slane %v804_v47, %v2436_v45  ;;  %v2599_v48 = vrot.slane %v580_v18, %v2436_v45 }
  0x2d   : > { %v2580_v42 = vrot.slane %v563_v24, %v2436_v45  ;;  %v2602_v49 = vrot.slane %v564_v27, %v2436_v45 }
  0x2e   : > { %353 = vrot.lane.b32.xlu1 %v328_v32, %s2283_s30  ;;  %3576 = vst [vmem:[#allocation8_spill] sm:$0xff] %v2506_v34  ;;  %3577 = vst [vmem:[#allocation9_spill] sm:$0xff] %v2509_v35  ;;  %v867_v32 = vcombine.low %v2498_v30, %v2495_v28  ;;  %v868_v36 = vcombine.high %v2498_v30, %v2495_v28 }
  0x2f   : > { %349 = vrot.lane.b32.xlu0 %v2395_v21, %s2283_s30  ;;  %v2555_v21 = vrot.slane %v1175_v6, %v2436_v45  ;;  %3580 = vst [vmem:[#allocation12_spill] sm:$0xff] %v2599_v48  ;;  %3581 = vst [vmem:[#allocation13_spill] sm:$0xff] %v2602_v49 }
  0x32   : > { %361 = vrot.lane.b32.xlu1 %v2411_v29, %s2283_s30 }
  0x33   : > { %357 = vrot.lane.b32.xlu0 %v2387_v16, %s2283_s30  ;;  %v2552_v16 = vrot.slane %v1191_v60, %v2436_v45 }
  0x36   : > { %351 = vrot.lane.b32.xlu1 %v2422_v37, %s2283_s30  ;;  %v2571_v37 = vrot.slane %v1192_v61, %v2436_v45 }
  0x37   : > { %347 = vrot.lane.b32.xlu0 %v321_v41, %s2283_s30  ;;  %v2577_v41 = vrot.slane %v579_v17, %v2436_v45 }
  0x38   : > { %3578 = vst [vmem:[#allocation10_spill] sm:$0xff] %v2571_v37 }
  0x3a   : > { %359 = vrot.lane.b32.xlu1 %v2425_v38, %s2283_s30  ;;  %v2574_v38 = vrot.slane %v1176_v7, %v2436_v45 }
  0x3b   : > { %355 = vrot.lane.b32.xlu0 %v331_v44, %s2283_s30 }
  0x3c   : > { %3579 = vst [vmem:[#allocation11_spill] sm:$0xff] %v2574_v38 }
  0x3e   : > { %276 = vrot.lane.b32.xlu1 %v2450_v54, %s2283_s30 }
  0x3f   : > { %272 = vrot.lane.b32.xlu0 %v246_v4, %s2283_s30 }
  0x42   : > { %284 = vrot.lane.b32.xlu1 %v2455_v56, %s2283_s30 }
  0x43   : > { %280 = vrot.lane.b32.xlu0 %v256_v1, %s2283_s30 }
  0x46   : > { %300 = vrot.lane.b32.xlu1 %v2450_v54, %s2281_s29 }
  0x47   : > { %296 = vrot.lane.b32.xlu0 %v246_v4, %s2281_s29 }
  0x4a   : > { %308 = vrot.lane.b32.xlu1 %v2455_v56, %s2281_s29  ;;  %v2284_v56 = vmov 1934713408  }
  0x4b   : > { %304 = vrot.lane.b32.xlu0 %v256_v1, %s2281_s29  ;;  %v462_v57 = vunpack.c.l.s4 %v2284_v56 }
  0x4d   : > { %v463_v61 = vunpack.c.0.s8 %v462_v57 }
  0x4e   : > { %274 = vrot.lane.b32.xlu1 %v2477_v9, %s2283_s30 }
  0x4f   : > { %270 = vrot.lane.b32.xlu0 %v244_v13, %s2283_s30 }
  0x52   : > { %282 = vrot.lane.b32.xlu1 %v2481_v10, %s2283_s30 }
  0x53   : > { %278 = vrot.lane.b32.xlu0 %v254_v19, %s2283_s30 }
  0x56   : > { %298 = vrot.lane.b32.xlu1 %v2477_v9, %s2281_s29 }
  0x57   : > { %294 = vrot.lane.b32.xlu0 %v244_v13, %s2281_s29  ;;  %v2634_v13 = vsub.s32 %v463_v61, %v2397_v22 }
  0x5a   : > { %306 = vrot.lane.b32.xlu1 %v2481_v10, %s2281_s29 }
  0x5b   : > { %302 = vrot.lane.b32.xlu0 %v254_v19, %s2281_s29 }
  0x5e   : > { %219 = vrot.lane.b32.xlu1 %v2382_v14, %s2281_s29 }
  0x5f   : > { %215 = vrot.lane.b32.xlu0 %v2371_v2, %s2281_s29 }
  0x62   : > { %227 = vrot.lane.b32.xlu1 %v2378_v8, %s2281_s29 }
  0x63   : > { %223 = vrot.lane.b32.xlu0 %v2367_v0, %s2281_s29 }
  0x66   : > { %217 = vrot.lane.b32.xlu1 %v2384_v15, %s2281_s29 }
  0x67   : > { %213 = vrot.lane.b32.xlu0 %v2390_v20, %s2281_s29 }
  0x6a   : > { %225 = vrot.lane.b32.xlu1 %v2400_v25, %s2281_s29 }
  0x6b   : > { %221 = vrot.lane.b32.xlu0 %v2402_v26, %s2281_s29 }
  0x6e   : > { %195 = vrot.lane.b32.xlu1 %v2382_v14, %s2283_s30 }
  0x6f   : > { %191 = vrot.lane.b32.xlu0 %v2371_v2, %s2283_s30 }
  0x72   : > { %203 = vrot.lane.b32.xlu1 %v2378_v8, %s2283_s30 }
  0x73   : > { %199 = vrot.lane.b32.xlu0 %v2367_v0, %s2283_s30 }
  0x76   : > { %193 = vrot.lane.b32.xlu1 %v2384_v15, %s2283_s30 }
  0x77   : > { %189 = vrot.lane.b32.xlu0 %v2390_v20, %s2283_s30 }
  0x7a   : > { %201 = vrot.lane.b32.xlu1 %v2400_v25, %s2283_s30 }
  0x7b   : > { %197 = vrot.lane.b32.xlu0 %v2402_v26, %s2283_s30 }
  0x90   : > { %v382_v55 = vpop.permute.xlu1 %381 }
  0x91   : > { %v374_v58 = vpop.permute.xlu0 %373 }
  0x92   : > { %v1551_v59 = vcombine.low %v374_v58, %v382_v55  ;;  %v1552_v62 = vcombine.high %v374_v58, %v382_v55 }
  0x94   : > { %v386_v60 = vpop.permute.xlu1 %385  ;;  %v1559_v6 = vrot.slane %v1551_v59, %v2436_v45  ;;  %v1566_v17 = vrot.slane %v1552_v62, %v2436_v45 }
  0x95   : > { %v378_v63 = vpop.permute.xlu0 %377 }
  0x96   : > { %v1567_v4 = vcombine.low %v378_v63, %v386_v60  ;;  %v1568_v1 = vcombine.high %v378_v63, %v386_v60 }
  0x98   : > { %v1575_v7 = vrot.slane %v1567_v4, %v2436_v45  ;;  %v1582_v9 = vrot.slane %v1568_v1, %v2436_v45  ;;  %v376_v10 = vpop.permute.xlu1 %375 }
  0x99   : > { %v372_v18 = vpop.permute.xlu0 %371 }
  0x9a   : > { %v1584_v19 = vcombine.high %v1559_v6, %v1575_v7  ;;  %v1600_v24 = vcombine.high %v1566_v17, %v1582_v9  ;;  %v1583_v27 = vcombine.low %v1559_v6, %v1575_v7 }
  0x9c   : > { %v384_v55 = vpop.permute.xlu1 %383  ;;  %v1598_v56 = vrot.slane %v1584_v19, %v2634_v13  ;;  %v2641_v22 = vrot.slane %v1600_v24, %v2634_v13  ;;  %v2647_v1 = vrot.slane %v1583_v27, %v2634_v13  ;;  %v1599_v19 = vcombine.low %v1566_v17, %v1582_v9 }
  0x9d   : > { %v955_v57 = vcombine.low %v376_v10, %v384_v55  ;;  %v380_v58 = vpop.permute.xlu0 %379  ;;  %v956_v61 = vcombine.high %v376_v10, %v384_v55 }
  0x9e   : > { %v939_v59 = vcombine.low %v372_v18, %v380_v58  ;;  %1792 = vrot.lane.b32.xlu0 %v1598_v56, %s2285_s4  ;;  %v940_v62 = vcombine.high %v372_v18, %v380_v58  ;;  %3582 = vst [vmem:[#allocation14_spill] sm:$0xff] %v2647_v1  ;;  %v1615_v27 = vcombine.high %v2647_v1, %v3536_v23 }
  0x9f   : > { %v963_v60 = vrot.slane %v955_v57, %v2436_v45  ;;  %v2654_v24 = vrot.slane %v956_v61, %v2436_v45 }
  0xa0   : > { %v947_v63 = vrot.slane %v939_v59, %v2436_v45  ;;  %v2644_v4 = vpop.permute.xlu1 %353  ;;  %v2657_v10 = vrot.slane %v940_v62, %v2436_v45 }
  0xa1   : > { %v2649_v6 = vpop.permute.xlu0 %349 }
  0xa2   : > { %1872 = vrot.lane.b32.xlu0 %v2641_v22, %s2286_s5  ;;  %v972_v7 = vcombine.high %v947_v63, %v963_v60  ;;  %v971_v59 = vcombine.low %v947_v63, %v963_v60  ;;  %v987_v54 = vcombine.low %v2657_v10, %v2654_v24  ;;  %v2689_v60 = vrot.slane %v1479_v11, %v2634_v13 }
  0xa4   : > { %v2659_v18 = vpop.permute.xlu1 %361  ;;  %v986_v55 = vrot.slane %v972_v7, %v2634_v13  ;;  %v2677_v7 = vrot.slane %v1599_v19, %v2634_v13  ;;  %3583 = vst [vmem:[#allocation15_spill] sm:$0xff] %v2689_v60  ;;  %v2694_v19 = vrot.slane %v987_v54, %v2634_v13 }
  0xa5   : > { %v1463_v57 = vcombine.low %v2644_v4, %v2659_v18  ;;  %v2666_v58 = vpop.permute.xlu0 %357 }
  0xa6   : > { %v1447_v9 = vcombine.low %v2649_v6, %v2666_v58  ;;  %1652 = vrot.lane.b32.xlu1 %v986_v55, %s2285_s4  ;;  %1772 = vrot.lane.b32.xlu0 %v1615_v27, %s2287_s6 }
  0xa7   : > { %v1471_v17 = vrot.slane %v1463_v57, %v2436_v45  ;;  %v2700_v57 = vrot.slane %v971_v59, %v2634_v13 }
  0xa8   : > { %v1455_v61 = vrot.slane %v1447_v9, %v2436_v45  ;;  %v2674_v62 = vpop.permute.xlu1 %351 }
  0xa9   : > { %v2681_v47 = vpop.permute.xlu0 %347  ;;  %3585 = vst [vmem:[#allocation17_spill] sm:$0xff] %v2700_v57  ;;  %v1003_v50 = vcombine.high %v2700_v57, %v3536_v23 }
  0xaa   : > { %v1511_v46 = vcombine.low %v1455_v61, %v1471_v17  ;;  %1832 = vrot.lane.b32.xlu1 %v2677_v7, %s2288_s7  ;;  %v1512_v44 = vcombine.high %v1455_v61, %v1471_v17  ;;  %v1004_v61 = vcombine.high %v986_v55, %v3536_v23 }
  0xac   : > { %v2691_v63 = vpop.permute.xlu1 %359  ;;  %v2697_v27 = vrot.slane %v1511_v46, %v2634_v13  ;;  %v1526_v17 = vrot.slane %v1512_v44, %v2634_v13 }
  0xad   : > { %v851_v9 = vcombine.low %v2674_v62, %v2691_v63  ;;  %v2704_v51 = vpop.permute.xlu0 %355 }
  0xae   : > { %3584 = vst [vmem:[#allocation16_spill] sm:$0xff] %v2697_v27  ;;  %v835_v11 = vcombine.low %v2681_v47, %v2704_v51  ;;  %1692 = vrot.lane.b32.xlu1 %v2694_v19, %s2288_s7  ;;  %v1544_v54 = vcombine.high %v2689_v60, %v2697_v27  ;;  %v3592_v27 = vmov 0.0  }
  0xaf   : > { %v859_v46 = vrot.slane %v851_v9, %v2436_v45  ;;  %v2728_v9 = vrot.slane %v867_v32, %v2634_v13  ;;  %v1494_v32 = vrot.slane %v1480_v12, %v2634_v13  ;;  %v882_v12 = vrot.slane %v868_v36, %v2634_v13 }
  0xb0   : > { %v843_v40 = vrot.slane %v835_v11, %v2436_v45  ;;  %1770 = vrot.lane.b32.xlu0 %v1544_v54, %s2287_s6  ;;  %v2715_v59 = vpop.permute.xlu1 %276  ;;  %v1616_v54 = vcombine.high %v1598_v56, %v3536_v23  ;;  %v1617_v60 = vcombine.high %v2677_v7, %v3592_v27 }
  0xb1   : > { %v2719_v33 = vpop.permute.xlu0 %272  ;;  %3586 = vst [vmem:[#allocation18_spill] sm:$0xff] %v2728_v9  ;;  %v1545_v53 = vcombine.low %v1494_v32, %v1526_v17  ;;  %v1546_v23 = vcombine.high %v1494_v32, %v1526_v17 }
  0xb2   : > { %v899_v29 = vcombine.low %v843_v40, %v859_v46  ;;  %1632 = vrot.lane.b32.xlu1 %v1003_v50, %s2287_s6  ;;  %v900_v43 = vcombine.high %v843_v40, %v859_v46 }
  0xb4   : > { %v2730_v11 = vpop.permute.xlu1 %284  ;;  %v2734_v31 = vrot.slane %v899_v29, %v2634_v13  ;;  %v914_v44 = vrot.slane %v900_v43, %v2634_v13 }
  0xb5   : > { %v2736_v39 = vpop.permute.xlu0 %280  ;;  %v1295_v29 = vcombine.low %v2715_v59, %v2730_v11 }
  0xb6   : > { %3587 = vst [vmem:[#allocation19_spill] sm:$0xff] %v2734_v31  ;;  %1812 = vrot.lane.b32.xlu1 %v1616_v54, %s2289_s8  ;;  %v932_v50 = vcombine.high %v2728_v9, %v2734_v31  ;;  %v1279_v56 = vcombine.low %v2719_v33, %v2736_v39  ;;  %v933_v30 = vcombine.low %v882_v12, %v914_v44 }
  0xb7   : > { %v1303_v54 = vrot.slane %v1295_v29, %v2436_v45 }
  0xb8   : > { %1630 = vrot.lane.b32.xlu0 %v932_v50, %s2287_s6  ;;  %v2751_v40 = vpop.permute.xlu1 %300  ;;  %v1287_v50 = vrot.slane %v1279_v56, %v2436_v45 }
  0xb9   : > { %v2754_v46 = vpop.permute.xlu0 %296 }
  0xba   : > { %1672 = vrot.lane.b32.xlu1 %v1004_v61, %s2289_s8  ;;  %v1343_v43 = vcombine.low %v1287_v50, %v1303_v54  ;;  %v1344_v37 = vcombine.high %v1287_v50, %v1303_v54 }
  0xbc   : > { %1790 = vrot.lane.b32.xlu0 %v1545_v53, %s2285_s4  ;;  %v2767_v55 = vpop.permute.xlu1 %308  ;;  %v2786_v57 = vrot.slane %v1343_v43, %v2634_v13 }
  0xbd   : > { %v1327_v61 = vcombine.low %v2751_v40, %v2767_v55  ;;  %v2771_v52 = vpop.permute.xlu0 %304 }
  0xbe   : > { %v1311_v28 = vcombine.low %v2754_v46, %v2771_v52  ;;  %1810 = vrot.lane.b32.xlu1 %v1546_v23, %s2289_s8  ;;  %3588 = vst [vmem:[#allocation20_spill] sm:$0xff] %v2786_v57 }
  0xbf   : > { %v1335_v36 = vrot.slane %v1327_v61, %v2436_v45  ;;  %v852_v61 = vcombine.high %v2674_v62, %v2691_v63 }
  0xc0   : > { %v1319_v29 = vrot.slane %v1311_v28, %v2436_v45  ;;  %1650 = vrot.lane.b32.xlu0 %v933_v30, %s2285_s4  ;;  %v2779_v56 = vpop.permute.xlu1 %274  ;;  %v836_v28 = vcombine.high %v2681_v47, %v2704_v51 }
  0xc1   : > { %v2781_v32 = vpop.permute.xlu0 %270  ;;  %v2811_v47 = vrot.slane %v852_v61, %v2436_v45  ;;  %v1464_v61 = vcombine.high %v2644_v4, %v2659_v18 }
  0xc2   : > { %v1375_v17 = vcombine.low %v1319_v29, %v1335_v36  ;;  %v2814_v51 = vrot.slane %v836_v28, %v2436_v45  ;;  %v1376_v63 = vcombine.high %v1319_v29, %v1335_v36  ;;  %v1448_v36 = vcombine.high %v2649_v6, %v2666_v58 }
  0xc3   : > { %3590 = vst [vmem:[#allocation22_spill] sm:$0xff] %v2811_v47  ;;  %v2850_v28 = vrot.slane %v1344_v37, %v2634_v13 }
  0xc4   : > { %v2783_v53 = vpop.permute.xlu1 %282  ;;  %v2789_v23 = vrot.slane %v1375_v17, %v2634_v13  ;;  %3591 = vst [vmem:[#allocation23_spill] sm:$0xff] %v2814_v51  ;;  %v2840_v29 = vrot.slane %v1376_v63, %v2634_v13 }
  0xc5   : > { %v2791_v1 = vpop.permute.xlu0 %278  ;;  %v683_v31 = vcombine.low %v2779_v56, %v2783_v53 }
  0xc6   : > { %3589 = vst [vmem:[#allocation21_spill] sm:$0xff] %v2789_v23  ;;  %v1408_v30 = vcombine.high %v2786_v57, %v2789_v23  ;;  %v667_v43 = vcombine.low %v2781_v32, %v2791_v1 }
  0xc8   : > { %1768 = vrot.lane.b32.xlu0 %v1408_v30, %s2287_s6  ;;  %v2804_v17 = vpop.permute.xlu1 %298  ;;  %v2819_v30 = vrot.slane %v683_v31, %v2436_v45  ;;  %v2822_v38 = vrot.slane %v667_v43, %v2436_v45  ;;  %v915_v31 = vcombine.low %v2814_v51, %v2811_v47  ;;  %v2853_v43 = vrot.slane %v1464_v61, %v2436_v45 }
  0xc9   : > { %v2806_v9 = vpop.permute.xlu0 %294 }
  0xca   : > { %v731_v6 = vcombine.low %v2822_v38, %v2819_v30  ;;  %v2869_v37 = vrot.slane %v915_v31, %v2634_v13 }
  0xcc   : > { %1852 = vrot.lane.b32.xlu0 %v1617_v60, %s2290_s9  ;;  %v2825_v62 = vpop.permute.xlu1 %306  ;;  %v934_v60 = vcombine.high %v882_v12, %v914_v44  ;;  %v3595_v44 = vcombine.low %v2509_v35, %v2506_v34  ;;  %v2875_v23 = vrot.slane %v731_v6, %v2634_v13  ;;  %v1005_v35 = vcombine.high %v2694_v19, %v3592_v27 }
  0xcd   : > { %v715_v7 = vcombine.low %v2804_v17, %v2825_v62  ;;  %v2833_v54 = vpop.permute.xlu0 %302  ;;  %v1007_v19 = vcombine.low %v2371_v2, %v2367_v0 }
  0xce   : > { %v699_v50 = vcombine.low %v2806_v9, %v2833_v54  ;;  %v2861_v63 = vrot.slane %v3595_v44, %v2634_v13  ;;  %3597 = vst [vmem:[#allocation27_spill] sm:$0xff] %v2875_v23 }
  0xcf   : > { %v723_v4 = vrot.slane %v715_v7, %v2436_v45  ;;  %v2864_v7 = vrot.slane %v1448_v36, %v2436_v45 }
  0xd0   : > { %v707_v18 = vrot.slane %v699_v50, %v2436_v45  ;;  %1670 = vrot.lane.b32.xlu0 %v934_v60, %s2289_s8  ;;  %v2847_v58 = vpop.permute.xlu1 %219  ;;  %v1409_v60 = vcombine.low %v2850_v28, %v2840_v29 }
  0xd1   : > { %3593 = vst [vmem:[#allocation24_spill] sm:$0xff] %v2847_v58  ;;  %v2855_v12 = vpop.permute.xlu0 %215  ;;  %v1527_v48 = vcombine.low %v2864_v7, %v2853_v43 }
  0xd2   : > { %3594 = vst [vmem:[#allocation25_spill] sm:$0xff] %v2855_v12  ;;  %v763_v50 = vcombine.low %v707_v18, %v723_v4 }
  0xd3   : > { %v1535_v51 = vrot.slane %v1527_v48, %v2634_v13  ;;  %v1023_v48 = vcombine.low %v2382_v14, %v2378_v8  ;;  %v988_v8 = vcombine.high %v2657_v10, %v2654_v24  ;;  %v3602_v24 = vcombine.low %v2580_v42, %v2577_v41 }
  0xd4   : > { %1788 = vrot.lane.b32.xlu0 %v1409_v60, %s2285_s4  ;;  %v2872_v61 = vpop.permute.xlu1 %227  ;;  %v2878_v44 = vrot.slane %v763_v50, %v2634_v13  ;;  %v935_v60 = vcombine.low %v2861_v63, %v2869_v37 }
  0xd5   : > { %3596 = vst [vmem:[#allocation26_spill] sm:$0xff] %v2872_v61  ;;  %v1159_v36 = vcombine.low %v2847_v58, %v2872_v61  ;;  %v2882_v57 = vpop.permute.xlu0 %223  ;;  %v2977_v10 = vrot.slane %v3602_v24, %v2634_v13 }
  0xd6   : > { %3598 = vst [vmem:[#allocation28_spill] sm:$0xff] %v2878_v44  ;;  %3599 = vst [vmem:[#allocation29_spill] sm:$0xff] %v2882_v57  ;;  %v1143_v31 = vcombine.low %v2855_v12, %v2882_v57  ;;  %v796_v6 = vcombine.high %v2875_v23, %v2878_v44  ;;  %v3600_v12 = vcombine.low %v2467_v3, %v2472_v5 }
  0xd7   : > { %v2893_v50 = vrot.slane %v1159_v36, %v2436_v45  ;;  %v3601_v36 = vcombine.low %v2555_v21, %v2552_v16  ;;  %3603 = vst [vmem:[#allocation30_spill] sm:$0xff] %v2977_v10 }
  0xd8   : > { %v2896_v49 = vrot.slane %v1143_v31, %v2436_v45  ;;  %1690 = vrot.lane.b32.xlu0 %v935_v60, %s2288_s7  ;;  %1628 = vrot.lane.b32.xlu1 %v796_v6, %s2287_s6  ;;  %v2900_v58 = vpop.permute.xlu1 %217  ;;  %v1503_v57 = vrot.slane %v3600_v12, %v2634_v13  ;;  %v764_v60 = vcombine.high %v707_v18, %v723_v4 }
  0xd9   : > { %v2902_v61 = vpop.permute.xlu0 %213  ;;  %v2912_v34 = vrot.slane %v3601_v36, %v2634_v13  ;;  %v732_v12 = vcombine.high %v2822_v38, %v2819_v30 }
  0xda   : > { %v1207_v6 = vcombine.low %v2896_v49, %v2893_v50  ;;  %v1548_v2 = vcombine.high %v1503_v57, %v1535_v51 }
  0xdb   : > { %v2953_v23 = vrot.slane %v732_v12, %v2634_v13 }
  0xdc   : > { %1712 = vrot.lane.b32.xlu1 %v1005_v35, %s2290_s9  ;;  %v2924_v47 = vpop.permute.xlu1 %225  ;;  %v2927_v36 = vrot.slane %v1207_v6, %v2634_v13  ;;  %v1547_v35 = vcombine.low %v1503_v57, %v1535_v51  ;;  %v2942_v6 = vrot.slane %v764_v60, %v2634_v13  ;;  %v3606_v51 = vcombine.high %v2467_v3, %v2472_v5 }
  0xdd   : > { %v547_v4 = vcombine.low %v2900_v58, %v2924_v47  ;;  %v2931_v18 = vpop.permute.xlu0 %221  ;;  %v1208_v3 = vcombine.high %v2896_v49, %v2893_v50  ;;  %v684_v49 = vcombine.high %v2779_v56, %v2783_v53  ;;  %v1328_v50 = vcombine.high %v2751_v40, %v2767_v55 }
  0xde   : > { %v531_v38 = vcombine.low %v2902_v61, %v2931_v18  ;;  %v1272_v30 = vcombine.high %v2927_v36, %v2912_v34  ;;  %v2996_v24 = vrot.slane %v3606_v51, %v2634_v13  ;;  %v395_v51 = vcombine.low %v2390_v20, %v2402_v26 }
  0xdf   : > { %v2945_v31 = vrot.slane %v547_v4, %v2436_v45  ;;  %v2962_v4 = vrot.slane %v1007_v19, %v2436_v45  ;;  %v936_v56 = vcombine.high %v2861_v63, %v2869_v37  ;;  %v1410_v40 = vcombine.high %v2850_v28, %v2840_v29 }
  0xe0   : > { %v2948_v44 = vrot.slane %v531_v38, %v2436_v45  ;;  %1830 = vrot.lane.b32.xlu1 %v1547_v35, %s2288_s7  ;;  %1766 = vrot.lane.b32.xlu0 %v1272_v30, %s2287_s6  ;;  %v2955_v14 = vpop.permute.xlu1 %195  ;;  %v2965_v38 = vrot.slane %v1023_v48, %v2436_v45  ;;  %v797_v30 = vcombine.low %v2953_v23, %v2942_v6 }
  0xe1   : > { %v2959_v60 = vpop.permute.xlu0 %191  ;;  %v3605_v48 = vcombine.high %v2555_v21, %v2552_v16  ;;  %v3057_v55 = vrot.slane %v1208_v3, %v2634_v13  ;;  %v3064_v63 = vrot.slane %v395_v51, %v2436_v45  ;;  %v3072_v29 = vrot.slane %v684_v49, %v2436_v45 }
  0xe2   : > { %v595_v12 = vcombine.low %v2948_v44, %v2945_v31  ;;  %v1071_v21 = vcombine.low %v2962_v4, %v2965_v38 }
  0xe3   : > { %v2988_v35 = vrot.slane %v3605_v48, %v2634_v13  ;;  %v700_v48 = vcombine.high %v2806_v9, %v2833_v54  ;;  %v411_v9 = vcombine.low %v2384_v15, %v2400_v25  ;;  %v668_v54 = vcombine.high %v2781_v32, %v2791_v1 }
  0xe4   : > { %1648 = vrot.lane.b32.xlu1 %v797_v30, %s2285_s4  ;;  %1850 = vrot.lane.b32.xlu0 %v1548_v2, %s2290_s9  ;;  %v2982_v19 = vrot.slane %v595_v12, %v2634_v13  ;;  %v2990_v57 = vpop.permute.xlu1 %203  ;;  %v716_v2 = vcombine.high %v2804_v17, %v2825_v62  ;;  %v3001_v12 = vrot.slane %v988_v8, %v2634_v13 }
  0xe5   : > { %v1055_v30 = vcombine.low %v2955_v14, %v2990_v57  ;;  %v3005_v16 = vpop.permute.xlu0 %199  ;;  %v1528_v17 = vcombine.high %v2864_v7, %v2853_v43  ;;  %v3067_v37 = vrot.slane %v411_v9, %v2436_v45  ;;  %v3075_v28 = vrot.slane %v668_v54, %v2436_v45 }
  0xe6   : > { %3604 = vst [vmem:[#allocation31_spill] sm:$0xff] %v2982_v19  ;;  %v660_v5 = vcombine.high %v2982_v19, %v2977_v10  ;;  %v1039_v8 = vcombine.low %v2959_v60, %v3005_v16  ;;  %v3049_v53 = vrot.slane %v716_v2, %v2436_v45  ;;  %v1280_v2 = vcombine.high %v2719_v33, %v2736_v39 }
  0xe7   : > { %v3020_v62 = vrot.slane %v1055_v30, %v2436_v45  ;;  %v1312_v30 = vcombine.high %v2754_v46, %v2771_v52  ;;  %v1296_v46 = vcombine.high %v2715_v59, %v2730_v11  ;;  %v3082_v11 = vrot.slane %v1328_v50, %v2436_v45 }
  0xe8   : > { %1732 = vrot.lane.b32.xlu1 %v3001_v12, %s2286_s5  ;;  %1626 = vrot.lane.b32.xlu0 %v660_v5, %s2287_s6  ;;  %v3034_v43 = vrot.slane %v1039_v8, %v2436_v45  ;;  %v3036_v7 = vpop.permute.xlu1 %193  ;;  %v3052_v5 = vrot.slane %v700_v48, %v2436_v45  ;;  %v1618_v48 = vcombine.high %v2641_v22, %v3592_v27 }
  0xe9   : > { %v3044_v1 = vpop.permute.xlu0 %189  ;;  %v3087_v33 = vrot.slane %v1528_v17, %v2634_v13  ;;  %v3094_v8 = vrot.slane %v1312_v30, %v2436_v45  ;;  %v1273_v9 = vcombine.low %v3057_v55, %v2988_v35  ;;  %v3103_v17 = vrot.slane %v1296_v46, %v2436_v45 }
  0xea   : > { %v1103_v52 = vcombine.low %v3034_v43, %v3020_v62  ;;  %v779_v51 = vcombine.low %v3052_v5, %v3049_v53  ;;  %v3109_v54 = vrot.slane %v1071_v21, %v2634_v13  ;;  %v3115_v30 = vrot.slane %v1280_v2, %v2436_v45 }
  0xeb   : > { %v1549_v21 = vcombine.low %v2996_v24, %v3087_v33  ;;  %v459_v46 = vcombine.low %v3064_v63, %v3067_v37  ;;  %v1391_v2 = vcombine.low %v3094_v8, %v3082_v11 }
  0xec   : > { %1808 = vrot.lane.b32.xlu1 %v1410_v40, %s2289_s8  ;;  %1710 = vrot.lane.b32.xlu0 %v936_v56, %s2290_s9  ;;  %v3079_v59 = vpop.permute.xlu1 %201  ;;  %3607 = vst [vmem:[#allocation32_spill] sm:$0xff] %v3109_v54  ;;  %v3112_v50 = vrot.slane %v1103_v52, %v2634_v13  ;;  %v747_v56 = vcombine.low %v3075_v28, %v3072_v29 }
  0xed   : > { %v443_v39 = vcombine.low %v3036_v7, %v3079_v59  ;;  %v3091_v3 = vpop.permute.xlu0 %197  ;;  %v3143_v32 = vrot.slane %v459_v46, %v2634_v13  ;;  %v1399_v19 = vrot.slane %v1391_v2, %v2634_v13 }
  0xee   : > { %v427_v22 = vcombine.low %v3044_v1, %v3091_v3  ;;  %3608 = vst [vmem:[#allocation33_spill] sm:$0xff] %v3112_v50  ;;  %v755_v52 = vrot.slane %v747_v56, %v2634_v13  ;;  %v1136_v46 = vcombine.high %v3109_v54, %v3112_v50 }
  0xef   : > { %v3106_v49 = vrot.slane %v443_v39, %v2436_v45  ;;  %v787_v39 = vrot.slane %v779_v51, %v2634_v13 }
  0xf0   : > { %1892 = vrot.lane.b32.xlu1 %v1618_v48, %s2291_s10  ;;  %1786 = vrot.lane.b32.xlu0 %v1273_v9, %s2285_s4  ;;  %v3122_v40 = vrot.slane %v427_v22, %v2436_v45  ;;  %v798_v48 = vcombine.high %v2953_v23, %v2942_v6  ;;  %v1359_v22 = vcombine.low %v3115_v30, %v3103_v17 }
  0xf1   : > { %v596_v23 = vcombine.high %v2948_v44, %v2945_v31  ;;  %v1006_v6 = vcombine.high %v3001_v12, %v3592_v27  ;;  %v799_v51 = vcombine.low %v755_v52, %v787_v39  ;;  %v3610_v44 = vld [vmem:[#allocation23_spill] sm:$0xff]  ;;  %v3611_v12 = vcombine.high %v2580_v42, %v2577_v41 }
  0xf2   : > { %v491_v9 = vcombine.low %v3122_v40, %v3106_v49  ;;  %v1367_v56 = vrot.slane %v1359_v22, %v2634_v13  ;;  %v1072_v42 = vcombine.high %v2962_v4, %v2965_v38  ;;  %v3615_v4 = vld [vmem:[#allocation26_spill] sm:$0xff]  ;;  %v3616_v38 = vld [vmem:[#allocation24_spill] sm:$0xff] }
  0xf3   : > { %v610_v27 = vrot.slane %v596_v23, %v2634_v13  ;;  %v642_v2 = vrot.slane %v3611_v12, %v2634_v13  ;;  %v532_v23 = vcombine.high %v2902_v61, %v2931_v18  ;;  %v800_v61 = vcombine.high %v755_v52, %v787_v39 }
  0xf4   : > { %1668 = vrot.lane.b32.xlu1 %v798_v48, %s2289_s8  ;;  %1870 = vrot.lane.b32.xlu0 %v1549_v21, %s2286_s5  ;;  %v3146_v10 = vrot.slane %v491_v9, %v2634_v13  ;;  %v3609_v48 = vld [vmem:[#allocation22_spill] sm:$0xff]  ;;  %v1411_v9 = vcombine.low %v1367_v56, %v1399_v19  ;;  %v1412_v22 = vcombine.high %v1367_v56, %v1399_v19  ;;  %v3613_v21 = vld [vmem:[#allocation8_spill] sm:$0xff] }
  0xf5   : > { %v916_v31 = vcombine.high %v3610_v44, %v3609_v48  ;;  %v548_v19 = vcombine.high %v2900_v58, %v2924_v47  ;;  %v1086_v56 = vrot.slane %v1072_v42, %v2634_v13  ;;  %v1160_v44 = vcombine.high %v3616_v38, %v3615_v4  ;;  %v3617_v47 = vld [vmem:[#allocation29_spill] sm:$0xff]  ;;  %v3620_v42 = vld [vmem:[#allocation12_spill] sm:$0xff] }
  0xf6   : > { %v524_v41 = vcombine.high %v3143_v32, %v3146_v10  ;;  %v3618_v58 = vld [vmem:[#allocation25_spill] sm:$0xff]  ;;  %v460_v4 = vcombine.high %v3064_v63, %v3067_v37 }
  0xf7   : > { %v930_v48 = vrot.slane %v916_v31, %v2634_v13  ;;  %v1144_v31 = vcombine.high %v3618_v58, %v3617_v47  ;;  %v3196_v18 = vrot.slane %v548_v19, %v2436_v45  ;;  %v3622_v19 = vld [vmem:[#allocation5_spill] sm:$0xff] }
  0xf8   : > { %1752 = vrot.lane.b32.xlu1 %v1006_v6, %s2291_s10  ;;  %1688 = vrot.lane.b32.xlu0 %v799_v51, %s2288_s7  ;;  %v661_v6 = vcombine.low %v610_v27, %v642_v2  ;;  %v3612_v51 = vld [vmem:[#allocation9_spill] sm:$0xff] }
  0xf9   : > { %v3614_v50 = vcombine.high %v3612_v51, %v3613_v21  ;;  %v3212_v52 = vrot.slane %v1144_v31, %v2436_v45  ;;  %v492_v31 = vcombine.high %v3122_v40, %v3106_v49  ;;  %v780_v49 = vcombine.high %v3052_v5, %v3049_v53 }
  0xfb   : > { %v898_v54 = vrot.slane %v3614_v50, %v2634_v13  ;;  %v1104_v50 = vcombine.high %v3034_v43, %v3020_v62  ;;  %v3199_v62 = vrot.slane %v532_v23, %v2436_v45  ;;  %v1274_v43 = vcombine.high %v3057_v55, %v2988_v35 }
  0xfc   : > { %1828 = vrot.lane.b32.xlu1 %v1411_v9, %s2288_s7  ;;  %1764 = vrot.lane.b32.xlu0 %v1136_v46, %s2287_s6  ;;  %v1392_v46 = vcombine.high %v3094_v8, %v3082_v11  ;;  %v1360_v11 = vcombine.high %v3115_v30, %v3103_v17  ;;  %v3209_v8 = vrot.slane %v1160_v44, %v2436_v45  ;;  %v3626_v44 = vld [vmem:[#allocation10_spill] sm:$0xff] }
  0xfd   : > { %v937_v21 = vcombine.low %v898_v54, %v930_v48  ;;  %v1118_v9 = vrot.slane %v1104_v50, %v2634_v13  ;;  %v611_v39 = vcombine.low %v3199_v62, %v3196_v18  ;;  %v1550_v35 = vcombine.high %v2996_v24, %v3087_v33  ;;  %v3623_v50 = vld [vmem:[#allocation6_spill] sm:$0xff] }
  0xfe   : > { %v1406_v12 = vrot.slane %v1392_v46, %v2634_v13  ;;  %v1374_v17 = vrot.slane %v1360_v11, %v2634_v13  ;;  %v1223_v30 = vcombine.low %v3212_v52, %v3209_v8  ;;  %v1008_v23 = vcombine.high %v3622_v19, %v2367_v0  ;;  %v3625_v0 = vld [vmem:[#allocation11_spill] sm:$0xff] }
  0xff   : > { %v1137_v55 = vcombine.low %v1086_v56, %v1118_v9  ;;  %v3627_v47 = vcombine.low %v3625_v0, %v3626_v44  ;;  %v444_v11 = vcombine.high %v3036_v7, %v3079_v59  ;;  %v794_v7 = vrot.slane %v780_v49, %v2634_v13  ;;  %v3632_v49 = vld [vmem:[#allocation18_spill] sm:$0xff] }
 0x100   : > { %1646 = vrot.lane.b32.xlu1 %v661_v6, %s2285_s4  ;;  %1848 = vrot.lane.b32.xlu0 %v1412_v22, %s2290_s9  ;;  %v619_v6 = vrot.slane %v611_v39, %v2634_v13  ;;  %v662_v22 = vcombine.high %v610_v27, %v642_v2  ;;  %v1413_v51 = vcombine.low %v1374_v17, %v1406_v12 }
 0x101   : > { %v1056_v27 = vcombine.high %v2955_v14, %v2990_v57  ;;  %v1040_v2 = vcombine.high %v2959_v60, %v3005_v16  ;;  %v1231_v38 = vrot.slane %v1223_v30, %v2634_v13  ;;  %v1263_v58 = vrot.slane %v3627_v47, %v2634_v13 }
 0x102   : > { %v3251_v37 = vrot.slane %v1008_v23, %v2436_v45  ;;  %v474_v60 = vrot.slane %v460_v4, %v2634_v13  ;;  %v396_v57 = vcombine.high %v2390_v20, %v2402_v26  ;;  %v412_v16 = vcombine.high %v2384_v15, %v2400_v25  ;;  %v3629_v4 = vld [vmem:[#allocation16_spill] sm:$0xff] }
 0x103   : > { %v3269_v40 = vrot.slane %v1040_v2, %v2436_v45  ;;  %v428_v39 = vcombine.high %v3044_v1, %v3091_v3  ;;  %v1138_v20 = vcombine.high %v1086_v56, %v1118_v9  ;;  %v506_v26 = vrot.slane %v492_v31, %v2634_v13 }
 0x104   : > { %1730 = vrot.lane.b32.xlu1 %v937_v21, %s2286_s5  ;;  %1624 = vrot.lane.b32.xlu0 %v524_v41, %s2287_s6  ;;  %v3619_v41 = vld [vmem:[#allocation13_spill] sm:$0xff]  ;;  %v3624_v21 = vld [vmem:[#allocation7_spill] sm:$0xff]  ;;  %v748_v15 = vcombine.high %v3075_v28, %v3072_v29  ;;  %v1414_v5 = vcombine.high %v1374_v17, %v1406_v12  ;;  %v3286_v1 = vrot.slane %v396_v57, %v2436_v45  ;;  %s2218_s6 = scalar_lea.vmem %s2083_s28, 256 }
 0x105   : > { %v3621_v24 = vcombine.low %v3619_v41, %v3620_v42  ;;  %v1024_v46 = vcombine.high %v3624_v21, %v3623_v50  ;;  %v3289_v59 = vrot.slane %v412_v16, %v2436_v45  ;;  %v3294_v28 = vrot.slane %v444_v11, %v2436_v45  ;;  %p2219_p11 = scmp.ne.s32.totalorder %s2083_s28, %s2218_s6 }
 0x106   : > { %v3297_v3 = vrot.slane %v428_v39, %v2436_v45  ;;  %v525_v56 = vcombine.low %v474_v60, %v506_v26  ;;  %v762_v9 = vrot.slane %v748_v15, %v2634_v13  ;;  %v1276_v50 = vcombine.high %v1231_v38, %v1263_v58 }
 0x107   : > { %v651_v33 = vrot.slane %v3621_v24, %v2634_v13  ;;  %v3254_v14 = vrot.slane %v1024_v46, %v2436_v45  ;;  %v3628_v46 = vld [vmem:[#allocation15_spill] sm:$0xff]  ;;  %p2220_p12 = pnand %p2219_p11, %p2352_p5 }
 0x108   : > { %1806 = vrot.lane.b32.xlu1 %v1274_v43, %s2289_s8  ;;  %1708 = vrot.lane.b32.xlu0 %v800_v61, %s2290_s9  ;;  %v938_v43 = vcombine.high %v898_v54, %v930_v48  ;;  %v3266_v54 = vrot.slane %v1056_v27, %v2436_v45  ;;  %v1275_v48 = vcombine.low %v1231_v38, %v1263_v58 }
 0x109   : > { %v663_v63 = vcombine.low %v619_v6, %v651_v33  ;;  %v1087_v53 = vcombine.low %v3251_v37, %v3254_v14  ;;  %v507_v17 = vcombine.low %v3297_v3, %v3294_v28  ;;  %v801_v45 = vcombine.low %v762_v9, %v794_v7  ;;  %p2221_p13 = pneg %p2220_p12 }
 0x10a   : > { %v1119_v29 = vcombine.low %v3269_v40, %v3266_v54  ;;  %v3630_v27 = vcombine.low %v3628_v46, %v3629_v4  ;;  %v802_v38 = vcombine.high %v762_v9, %v794_v7  ;;  %v3631_v58 = vcombine.high %v3625_v0, %v3626_v44 }
 0x10b   : > { %v515_v24 = vrot.slane %v507_v17, %v2634_v13  ;;  %v3635_v0 = vcombine.high %v3619_v41, %v3620_v42  ;;  %v476_v9 = vcombine.high %v3286_v1, %v3289_v59 }
 0x10c   : > { %1890 = vrot.lane.b32.xlu1 %v1550_v35, %s2291_s10  ;;  %1784 = vrot.lane.b32.xlu0 %v1137_v55, %s2285_s4  ;;  %v1095_v35 = vrot.slane %v1087_v53, %v2634_v13  ;;  %v475_v55 = vcombine.low %v3286_v1, %v3289_v59  ;;  %v1127_v12 = vrot.slane %v1119_v29, %v2634_v13 }
 0x10e   : > { %v1139_v21 = vcombine.low %v1095_v35, %v1127_v12  ;;  %v1140_v16 = vcombine.high %v1095_v35, %v1127_v12  ;;  %v1977_v35 = vld [vmem:[%s3534_s2] sm:$0xff] }
 0x110   : > { %1666 = vrot.lane.b32.xlu1 %v662_v22, %s2289_s8  ;;  %1868 = vrot.lane.b32.xlu0 %v1413_v51, %s2286_s5  ;;  %v3248_v61 = vpop.permute.xlu0 %1792  ;;  %v664_v22 = vcombine.high %v619_v6, %v651_v33  ;;  %v483_v51 = vrot.slane %v475_v55, %v2634_v13  ;;  %v1224_v6 = vcombine.high %v3212_v52, %v3209_v8 }
 0x111   : > { %v526_v33 = vcombine.high %v474_v60, %v506_v26  ;;  %v612_v8 = vcombine.high %v3199_v62, %v3196_v18  ;;  %v1120_v52 = vcombine.high %v3269_v40, %v3266_v54  ;;  %v658_v18 = vrot.slane %v3635_v0, %v2634_v13 }
 0x112   : > { %v527_v47 = vcombine.low %v483_v51, %v515_v24  ;;  %v1238_v57 = vrot.slane %v1224_v6, %v2634_v13  ;;  %v3640_v6 = vld [vmem:[#allocation28_spill] sm:$0xff] }
 0x113   : > { %v626_v44 = vrot.slane %v612_v8, %v2634_v13 }
 0x114   : > { %1750 = vrot.lane.b32.xlu1 %v938_v43, %s2291_s10  ;;  %1686 = vrot.lane.b32.xlu0 %v663_v63, %s2288_s7  ;;  %v3278_v25 = vpop.permute.xlu0 %1872  ;;  %v1270_v43 = vrot.slane %v3631_v58, %v2634_v13  ;;  %v1088_v63 = vcombine.high %v3251_v37, %v3254_v14  ;;  %v1134_v37 = vrot.slane %v1120_v52, %v2634_v13 }
 0x115   : > { %v665_v42 = vcombine.low %v626_v44, %v658_v18 }
 0x116   : > { %v1102_v62 = vrot.slane %v1088_v63, %v2634_v13  ;;  %v1277_v40 = vcombine.low %v1238_v57, %v1270_v43  ;;  %v1278_v29 = vcombine.high %v1238_v57, %v1270_v43  ;;  %v3642_v57 = vcombine.low %v2927_v36, %v2912_v34  ;;  %v3644_v34 = vld [vmem:[#allocation31_spill] sm:$0xff]  ;;  %v3645_v36 = vld [vmem:[#allocation30_spill] sm:$0xff] }
 0x118   : > { %1826 = vrot.lane.b32.xlu1 %v1275_v48, %s2288_s7  ;;  %1804 = vrot.lane.b32.xlu0 %v1138_v20, %s2289_s8  ;;  %v3308_v30 = vpop.permute.xlu0 %1772  ;;  %v3314_v19 = vpop.permute.xlu1 %1652  ;;  %v3633_v48 = vld [vmem:[#allocation19_spill] sm:$0xff]  ;;  %v528_v20 = vcombine.high %v483_v51, %v515_v24  ;;  %v1141_v15 = vcombine.low %v1102_v62, %v1134_v37  ;;  %v3637_v51 = vld [vmem:[#allocation21_spill] sm:$0xff] }
 0x119   : > { %v3634_v11 = vcombine.low %v3632_v49, %v3633_v48 }
 0x11c   : > { %1644 = vrot.lane.b32.xlu1 %v525_v56, %s2285_s4  ;;  %1888 = vrot.lane.b32.xlu0 %v1414_v5, %s2291_s10  ;;  %v3324_v31 = vpop.permute.xlu1 %1832  ;;  %v508_v5 = vcombine.high %v3297_v3, %v3294_v28  ;;  %v1142_v56 = vcombine.high %v1102_v62, %v1134_v37  ;;  %v490_v28 = vrot.slane %v476_v9, %v2634_v13  ;;  %v2292_v3 = vmov 0   ;;  %s2080_s4 = scalar_lea.hbm %s3535_s3, %s2155_s26 }
 0x11d   : > { %2209 = vset.pattern.permute.xlu0 %v2292_v3  ;;  %v3646_v62 = vcombine.low %v3644_v34, %v3645_v36 }
 0x11e   : > { %v522_v55 = vrot.slane %v508_v5, %v2634_v13 }
 0x120   : > { %1728 = vrot.lane.b32.xlu1 %v801_v45, %s2286_s5  ;;  %1706 = vrot.lane.b32.xlu0 %v664_v22, %s2290_s9  ;;  %v3352_v14 = vpop.permute.xlu1 %1692  ;;  %v666_v45 = vcombine.high %v626_v44, %v658_v18  ;;  %v3636_v22 = vld [vmem:[#allocation20_spill] sm:$0xff]  ;;  %v530_v46 = vcombine.high %v490_v28, %v522_v55 }
 0x121   : > { %v3638_v1 = vcombine.low %v3636_v22, %v3637_v51 }
 0x122   : > { %v1771_v23 = vpop.permute.xlu0 %1770 }
 0x123   : > { %v1944_v2 = vsel %vm1899_vm2, %v3630_v27, %v1771_v23  ;;  %v529_v23 = vcombine.low %v490_v28, %v522_v55 }
 0x124   : > { %1846 = vrot.lane.b32.xlu1 %v1276_v50, %s2290_s9  ;;  %1824 = vrot.lane.b32.xlu0 %v1139_v21, %s2288_s7  ;;  %v1633_v7 = vpop.permute.xlu1 %1632 }
 0x128   : > { %1664 = vrot.lane.b32.xlu1 %v526_v33, %s2289_s8  ;;  %1684 = vrot.lane.b32.xlu0 %v527_v47, %s2288_s7  ;;  %v1813_v12 = vpop.permute.xlu1 %1812  ;;  %s2293_s7 = smov [#allocation2]  }
 0x129   : > { %s2222_s16 = sshll.u32 %s2293_s7, 4  ;;  %s2223_s16 = int_to_ptr.vmem [resolvable:$false] %s2222_s16 }
 0x12a   : > { %v1631_v60 = vpop.permute.xlu0 %1630  ;;  %s2224_s8 = scalar_lea.vmem %s2223_s16, 512  ;;  %p2225_p0 = scmp.lt.s32.totalorder %s2083_s28, %s2223_s16 }
 0x12b   : > { %v1903_v39 = vsel %vm1899_vm2, %v3634_v11, %v1631_v60  ;;  %p2226_p1 = scmp.lt.s32.totalorder %s2224_s8, %s2218_s6 }
 0x12c   : > { %1748 = vrot.lane.b32.xlu1 %v802_v38, %s2291_s10  ;;  %1844 = vrot.lane.b32.xlu0 %v1140_v16, %s2290_s9  ;;  %v1673_v50 = vpop.permute.xlu1 %1672  ;;  %v3643_v16 = vld [vmem:[#allocation14_spill] sm:$0xff] }
 0x12d   : > { %v1945_v49 = vsel %vm1899_vm2, %v3643_v16, %v3308_v30  ;;  %p2227_p2 = por %p2226_p1, %p2225_p0 }
 0x12e   : > { %v1791_v54 = vpop.permute.xlu0 %1790  ;;  %v1950_v11 = vsel %vm1905_vm3, %v1945_v49, %v3248_v61  ;;  %v3647_v61 = vld [vmem:[#allocation17_spill] sm:$0xff] }
 0x12f   : > { %v3355_v26 = vsel %vm1905_vm3, %v1944_v2, %v1791_v54  ;;  %v3639_v2 = vld [vmem:[#allocation27_spill] sm:$0xff]  ;;  %v1955_v18 = vsel %vm1911_vm4, %v1950_v11, %v1813_v12  ;;  %p2228_p3 = pnand %p2227_p2, %p2221_p13 }
 0x130   : > { %1866 = vrot.lane.b32.xlu1 %v1277_v40, %s2286_s5  ;;  %1704 = vrot.lane.b32.xlu0 %v528_v20, %s2290_s9  ;;  %v1811_v13 = vpop.permute.xlu1 %1810  ;;  %v3641_v33 = vcombine.low %v3639_v2, %v3640_v6  ;;  %v1960_v30 = vsel %vm1917_vm5, %v1955_v18, %v3324_v31  ;;  %v1904_v20 = vsel %vm1899_vm2, %v3647_v61, %v1633_v7 }
 0x132   : > { %v1651_v41 = vpop.permute.xlu0 %1650 }
 0x133   : > { %v3360_v53 = vsel %vm1905_vm3, %v1903_v39, %v1651_v41 }
 0x134   : > { %1726 = vrot.lane.b32.xlu1 %v665_v42, %s2286_s5  ;;  %1864 = vrot.lane.b32.xlu0 %v1141_v15, %s2286_s5 }
 0x138   : > { %1886 = vrot.lane.b32.xlu1 %v1278_v29, %s2291_s10  ;;  %1884 = vrot.lane.b32.xlu0 %v1142_v56, %s2291_s10  ;;  %v1910_v29 = vsel %vm1905_vm3, %v1904_v20, %v3314_v19 }
 0x139   : > { %v1916_v56 = vsel %vm1911_vm4, %v1910_v29, %v1673_v50 }
 0x13a   : > { %v1769_v17 = vpop.permute.xlu0 %1768 }
 0x13b   : > { %v3379_v59 = vsel %vm1899_vm2, %v3638_v1, %v1769_v17 }
 0x13c   : > { %1746 = vrot.lane.b32.xlu1 %v666_v45, %s2291_s10  ;;  %1980 = vperm.xlu0 %2209, %v1977_v35   ;;  %v1922_v35 = vsel %vm1917_vm5, %v1916_v56, %v3352_v14  ;;  %v1954_v14 = vsel %vm1911_vm4, %v3355_v26, %v1811_v13 }
 0x13e   : > { %v1853_v24 = vpop.permute.xlu0 %1852 }
 0x13f   : > { %v1965_v40 = vsel %vm1923_vm6, %v1960_v30, %v1853_v24 }
 0x140   : > { %1724 = vrot.lane.b32.xlu1 %v529_v23, %s2286_s5  ;;  %v1970_v15 = vsel %vm1929_vm7, %v1965_v40, %v3278_v25  ;;  %s2068_s5 = scalar_lea.sflag [#allocation3], %s161_s24 }
 0x142   : > { %v3383_v21 = vpop.permute.xlu0 %1670 }
 0x144   : > { %1744 = vrot.lane.b32.xlu1 %v530_v46, %s2291_s10 }
 0x146   : > { %v3386_v4 = vpop.permute.xlu0 %1788 }
 0x14a   : > { %v1629_v27 = vpop.permute.xlu1 %1628  ;;  %v1691_v38 = vpop.permute.xlu0 %1690 }
 0x14b   : > { %v1902_v47 = vsel %vm1899_vm2, %v3641_v33, %v1629_v27 }
 0x14e   : > { %v1713_v58 = vpop.permute.xlu1 %1712 }
 0x14f   : > { %v1928_v55 = vsel %vm1923_vm6, %v1922_v35, %v1713_v58  ;;  %v3648_v35 = vld [vmem:[#allocation32_spill] sm:$0xff] }
 0x152   : > { %v1831_v43 = vpop.permute.xlu1 %1830  ;;  %v1767_v63 = vpop.permute.xlu0 %1766 }
 0x153   : > { %v1942_v8 = vsel %vm1899_vm2, %v3642_v57, %v1767_v63  ;;  %v1959_v50 = vsel %vm1917_vm5, %v1954_v14, %v1831_v43  ;;  %v1915_v63 = vsel %vm1911_vm4, %v3360_v53, %v3383_v21 }
 0x154   : > { %v1921_v57 = vsel %vm1917_vm5, %v1915_v63, %v1691_v38 }
 0x156   : > { %v1649_v52 = vpop.permute.xlu1 %1648  ;;  %v1851_v60 = vpop.permute.xlu0 %1850 }
 0x157   : > { %v3400_v48 = vsel %vm1905_vm3, %v1902_v47, %v1649_v52  ;;  %v1964_v46 = vsel %vm1923_vm6, %v1959_v50, %v1851_v60  ;;  %v1948_v60 = vsel %vm1905_vm3, %v3379_v59, %v3386_v4 }
 0x15a   : > { %v1733_v39 = vpop.permute.xlu1 %1732  ;;  %v1627_v0 = vpop.permute.xlu0 %1626 }
 0x15b   : > { %v3409_v44 = vsel %vm1899_vm2, %v3646_v62, %v1627_v0  ;;  %v1934_v25 = vsel %vm1929_vm7, %v1928_v55, %v1733_v39  ;;  %v3649_v55 = vld [vmem:[#allocation33_spill] sm:$0xff] }
 0x15e   : > { %v1809_v37 = vpop.permute.xlu1 %1808  ;;  %v1711_v54 = vpop.permute.xlu0 %1710 }
 0x15f   : > { %v1927_v26 = vsel %vm1923_vm6, %v1921_v57, %v1711_v54  ;;  %v1953_v11 = vsel %vm1911_vm4, %v1948_v60, %v1809_v37 }
 0x162   : > { %v1893_v41 = vpop.permute.xlu1 %1892  ;;  %v1787_v42 = vpop.permute.xlu0 %1786 }
 0x163   : > { %v3419_v5 = vsel %vm1905_vm3, %v1942_v8, %v1787_v42  ;;  %v1975_v31 = vsel %vm1935_vm8, %v1970_v15, %v1893_v41 }
 0x164   : > { %2147 = vmatprep.subr.msk.mxu0 %vm1987_vm9, %v1975_v31 }
 0x166   : > { %v1669_v9 = vpop.permute.xlu1 %1668  ;;  %v1871_v7 = vpop.permute.xlu0 %1870 }
 0x167   : > { %v1969_v27 = vsel %vm1929_vm7, %v1964_v46, %v1871_v7  ;;  %v1914_v37 = vsel %vm1911_vm4, %v3400_v48, %v1669_v9 }
 0x16a   : > { %v1753_v12 = vpop.permute.xlu1 %1752  ;;  %v1689_v17 = vpop.permute.xlu0 %1688 }
 0x16b   : > { %v1940_v45 = vsel %vm1935_vm8, %v1934_v25, %v1753_v12  ;;  %v1920_v54 = vsel %vm1917_vm5, %v1914_v37, %v1689_v17  ;;  %v3650_v25 = vcombine.low %v3648_v35, %v3649_v55 }
 0x16c   : > { %2148 = vmatpush1.msk.msra.mxu0 %vm1987_vm9, %v1940_v45 }
 0x16e   : > { %v1829_v19 = vpop.permute.xlu1 %1828  ;;  %v1765_v28 = vpop.permute.xlu0 %1764 }
 0x16f   : > { %v1958_v53 = vsel %vm1917_vm5, %v1953_v11, %v1829_v19  ;;  %v1941_v12 = vsel %vm1899_vm2, %v3650_v25, %v1765_v28 }
 0x172   : > { %v1647_v3 = vpop.permute.xlu1 %1646  ;;  %v1849_v22 = vpop.permute.xlu0 %1848 }
 0x173   : > { %v1963_v21 = vsel %vm1923_vm6, %v1958_v53, %v1849_v22  ;;  %v1907_v17 = vsel %vm1905_vm3, %v3409_v44, %v1647_v3 }
 0x176   : > { %v1731_v51 = vpop.permute.xlu1 %1730  ;;  %v3432_v1 = vpop.permute.xlu0 %1624 }
 0x177   : > { %v1933_v13 = vsel %vm1929_vm7, %v1927_v26, %v1731_v51 }
 0x17a   : > { %v1807_v24 = vpop.permute.xlu1 %1806  ;;  %v1709_v23 = vpop.permute.xlu0 %1708 }
 0x17b   : > { %v1926_v40 = vsel %vm1923_vm6, %v1920_v54, %v1709_v23  ;;  %v1952_v56 = vsel %vm1911_vm4, %v3419_v5, %v1807_v24 }
 0x17e   : > { %v1891_v2 = vpop.permute.xlu1 %1890  ;;  %v1785_v6 = vpop.permute.xlu0 %1784 }
 0x17f   : > { %v1974_v33 = vsel %vm1935_vm8, %v1969_v27, %v1891_v2  ;;  %v1946_v22 = vsel %vm1905_vm3, %v1941_v12, %v1785_v6  ;;  %v3651_v27 = vcombine.low %v3143_v32, %v3146_v10 }
 0x180   : > { %2018 = vmatprep.subr.mxu0 %v1974_v33 }
 0x181   : > { %v1900_v2 = vsel %vm1899_vm2, %v3651_v27, %v3432_v1 }
 0x182   : > { %v1667_v47 = vpop.permute.xlu1 %1666  ;;  %v1869_v58 = vpop.permute.xlu0 %1868 }
 0x183   : > { %v1968_v38 = vsel %vm1929_vm7, %v1963_v21, %v1869_v58  ;;  %v1913_v5 = vsel %vm1911_vm4, %v1907_v17, %v1667_v47 }
 0x186   : > { %v1751_v43 = vpop.permute.xlu1 %1750  ;;  %v1687_v8 = vpop.permute.xlu0 %1686 }
 0x187   : > { %v1939_v52 = vsel %vm1935_vm8, %v1933_v13, %v1751_v43  ;;  %v1919_v24 = vsel %vm1917_vm5, %v1913_v5, %v1687_v8  ;;  %v1976_v13 = vld [vmem:[%s3533_s1] sm:$0xff] }
 0x188   : > { %2019 = vmatpush1.msra.mxu0 %v1939_v52 }
 0x18a   : > { %v1827_v16 = vpop.permute.xlu1 %1826  ;;  %v1805_v49 = vpop.permute.xlu0 %1804 }
 0x18b   : > { %v1957_v48 = vsel %vm1917_vm5, %v1952_v56, %v1827_v16  ;;  %v1951_v23 = vsel %vm1911_vm4, %v1946_v22, %v1805_v49 }
 0x18e   : > { %v1645_v39 = vpop.permute.xlu1 %1644  ;;  %v1889_v0 = vpop.permute.xlu0 %1888 }
 0x18f   : > { %v1973_v18 = vsel %vm1935_vm8, %v1968_v38, %v1889_v0  ;;  %v1906_v47 = vsel %vm1905_vm3, %v1900_v2, %v1645_v39 }
 0x190   : > { %2020 = vmatprep.subr.mxu0 %v1973_v18 }
 0x192   : > { %v1729_v34 = vpop.permute.xlu1 %1728  ;;  %v1707_v36 = vpop.permute.xlu0 %1706 }
 0x193   : > { %v1932_v61 = vsel %vm1929_vm7, %v1926_v40, %v1729_v34  ;;  %v1925_v14 = vsel %vm1923_vm6, %v1919_v24, %v1707_v36 }
 0x196   : > { %v1847_v62 = vpop.permute.xlu1 %1846  ;;  %v1825_v30 = vpop.permute.xlu0 %1824 }
 0x197   : > { %v1962_v9 = vsel %vm1923_vm6, %v1957_v48, %v1847_v62  ;;  %v1956_v28 = vsel %vm1917_vm5, %v1951_v23, %v1825_v30 }
 0x19a   : > { %v1665_v59 = vpop.permute.xlu1 %1664  ;;  %v1685_v4 = vpop.permute.xlu0 %1684 }
 0x19b   : > { %v1912_v63 = vsel %vm1911_vm4, %v1906_v47, %v1665_v59 }
 0x19c   : > { %v1918_v26 = vsel %vm1917_vm5, %v1912_v63, %v1685_v4 }
 0x19e   : > { %v1749_v20 = vpop.permute.xlu1 %1748  ;;  %v1845_v41 = vpop.permute.xlu0 %1844 }
 0x19f   : > { %v1938_v42 = vsel %vm1935_vm8, %v1932_v61, %v1749_v20  ;;  %v1961_v44 = vsel %vm1923_vm6, %v1956_v28, %v1845_v41 }
 0x1a0   : > { %2021 = vmatpush1.msra.mxu0 %v1938_v42 }
 0x1a2   : > { %v1867_v15 = vpop.permute.xlu1 %1866  ;;  %v1705_v31 = vpop.permute.xlu0 %1704 }
 0x1a3   : > { %v1967_v45 = vsel %vm1929_vm7, %v1962_v9, %v1867_v15  ;;  %v1924_v10 = vsel %vm1923_vm6, %v1918_v26, %v1705_v31 }
 0x1a6   : > { %v1727_v29 = vpop.permute.xlu1 %1726  ;;  %v1865_v7 = vpop.permute.xlu0 %1864 }
 0x1a7   : > { %v1931_v3 = vsel %vm1929_vm7, %v1925_v14, %v1727_v29  ;;  %v1966_v6 = vsel %vm1929_vm7, %v1961_v44, %v1865_v7 }
 0x1aa   : > { %v1887_v19 = vpop.permute.xlu1 %1886  ;;  %v1885_v50 = vpop.permute.xlu0 %1884 }
 0x1ab   : > { %v1972_v51 = vsel %vm1935_vm8, %v1967_v45, %v1887_v19  ;;  %v1971_v58 = vsel %vm1935_vm8, %v1966_v6, %v1885_v50 }
 0x1ac   : > { %2022 = vmatprep.subr.mxu0 %v1972_v51 }
 0x1ae   : > { %v1747_v46 = vpop.permute.xlu1 %1746 }
 0x1af   : > { %v1937_v33 = vsel %vm1935_vm8, %v1931_v3, %v1747_v46 }
 0x1b0   : > { %2023 = vmatpush1.msra.mxu0 %v1937_v33 }
 0x1b1   : > { %2024 = vmatprep.subr.mxu0 %v1971_v58 }
 0x1b2   : > { %v1725_v57 = vpop.permute.xlu1 %1724 }
 0x1b3   : > { %v1930_v32 = vsel %vm1929_vm7, %v1924_v10, %v1725_v57 }
 0x1b6   : > { %v1745_v1 = vpop.permute.xlu1 %1744 }
 0x1b7   : > { %v1936_v43 = vsel %vm1935_vm8, %v1930_v32, %v1745_v1  ;;  %v1981_v8 = vpop.permute.xlu0 %1980 }
 0x1b8   : > { %2025 = vmatpush1.msra.mxu0 %v1936_v43 }
 0x1b9   : > { %2149 = vmatmul.mubr.msk.f32.vlgmr.msra.gmra.mxu0 %vm1983_vm10, %v1976_v13 }
 0x279   : > { %v2060_v52 = vpop.f32.mrf.mxu0 }
 0x27a   : > { %v2061_v60 = vadd.f32 %v2060_v52, %v1981_v8 }
 0x27b   : > { %v2062_v16 = vpop.f32.mrf.mxu0 }
 0x27c   : > { %2065 = vst [vmem:[%s163_s27] sm:$0xff] %v2061_v60  ;;  %v2063_v49 = vadd.f32 %v2062_v16, %v1981_v8 }
 0x27e   : > { %2066 = vst [vmem:[%s163_s27 + $0x8] sm:$0xff] %v2063_v49 }
 0x27f   : > { %2231 = shalt.err (!%p2228_p3)
}
 0x280   : > { %s2232_s9 = scalar_lea.hbm %s2080_s4, 256  ;;  %s2236_s17 = scalar_lea.hbm %s3535_s3, 512 }
 0x281   : > { %p2233_p4 = scmp.ne.s32.totalorder %s2080_s4, %s2232_s9  ;;  %p2237_p9 = scmp.lt.s32.totalorder %s2080_s4, %s3535_s3 }
 0x282   : > { %p2238_p10 = scmp.lt.s32.totalorder %s2236_s17, %s2232_s9 }
 0x283   : > { %p2234_p7 = pnand %p2233_p4, %p2352_p5 }
 0x284   : > { %p2239_p11 = por %p2238_p10, %p2237_p9 }
 0x285   : > { %p2235_p8 = pneg %p2234_p7 }
 0x287   : > { %p2240_p12 = pnand %p2239_p11, %p2235_p8 }
 0x289   : > { %2243 = shalt.err (!%p2240_p12)
}
 0x28a   : > { %2157 = dma.vmem_to_hbm [thread:$0]  (%p2352_p5), %s2083_s28, 256, %s2080_s4, %s2068_s5  }
 0x28b PF: > { %p2163_p13 = scmp.ge.s32.totalorder %s2278_s15, 2  ;;  %s2094_s24 = sand.u32 1, %s2266_s12  }
 0x28c   : > { %s2095_s25 = scalar_lea.sflag [#allocation3], %s2094_s24 }
 0x28d   : > { %p2160_p0 = pnand %p2163_p13, %p2356_p6 }
 0x28f   : > { %p2161_p1 = pneg %p2160_p0 }
 0x291   : > { %2261 = dma.done.wait (%p2161_p1), %s2095_s25, 256  }
 0x292   : > { %2263 = vsyncadd (%p2161_p1), %s2095_s25, 4294967040  ;;  %p13_p2 = scmp.ge.s32.totalorder %s2339_s18, 4   ;;  %s3652_s12 = smov %s2270_s13 }
 0x293   : > { %s3653_s13 = smov %s2274_s14  ;;  %s3654_s14 = smov %s2350_s21 }
 0x294   : > { %s3655_s15 = smov %s2339_s18  ;;  %15 = sbr.rel (!%p13_p2) target bundleno = 3 (0x3), region = 67 }
 0x299   :  { %2100 = vsyncpa [#allocation3], 1 }
 0x29a   :  { %2102 = vsyncpa [#allocation3 + $0x1], 1 }

</bundles_post_ra>
